<compile_context>
chip_gen: v7x
topology: tpu7x:2x2x1
jax: 0.10.0
libtpu: 0.0.40
codegen_flags: <defaults>
</compile_context>

<pallas_src>
import functools

import jax
import jax.numpy as jnp
import numpy as np
from jax.experimental import pallas as pl
from jax.experimental.pallas import tpu as pltpu


def _ufl_kernel(logs_ref, lab_ref, out_ref, *, gamma, delta, eps):
    """Accumulate per-(batch, spatial-group) partial statistics for one S tile.

    out_ref rows (lane-wise partial sums; lanes are reduced in JAX afterwards):
      [0      .. C-2 ]   tp_c  = sum(y_c * p_c)   for foreground channels
      [C-1    .. 2C-3]   sp_c  = sum(p_c)         for foreground channels
      [2C-2   .. 3C-4]   sy_c  = sum(y_c)         for foreground channels
      [3C-3]             focal = sum(coef * log_softmax at the label channel)
    """
    C = logs_ref.shape[1]
    s = pl.program_id(2)

    @pl.when(s == 0)
    def _():
        out_ref[...] = jnp.zeros(out_ref.shape, out_ref.dtype)

    lab = lab_ref[0].astype(jnp.int32)                     # (R, 128)
    valid = lab >= 0                                       # padding marked -1
    ys = [lab == c for c in range(C)]

    # logits, upcast to f32 in VMEM, one lane-dense (R, 128) plane per channel
    xs = [logs_ref[0, c].astype(jnp.float32) for c in range(C)]

    # channel softmax via an unrolled static channel loop (VPU elementwise only)
    m = xs[0]
    for c in range(1, C):
        m = jnp.maximum(m, xs[c])
    zs = [x - m for x in xs]
    es = [jnp.exp(z) for z in zs]
    se = es[0]
    for c in range(1, C):
        se = se + es[c]
    inv_se = 1.0 / se                       # one exact reciprocal per pixel
    log_se = jnp.log(se)
    preds = [e * inv_se for e in es]

    # ---------------- modifiedFocalLoss partial sum ----------------
    # log-prob only at the label channel: logp_lab = z_lab - log(sum exp)
    z_lab = jnp.where(ys[0], zs[0], 0.0)
    for c in range(1, C):
        z_lab = jnp.where(ys[c], zs[c], z_lab)
    logp_lab = z_lab - log_se

    pred0 = jnp.clip(preds[0], eps, 1.0 - eps)
    w_bg = jnp.power(1.0 - pred0, gamma) * (1.0 - delta)
    coef = jnp.where(ys[0], w_bg, delta)
    focal = jnp.where(valid, coef * logp_lab, 0.0)
    focal_row = jnp.sum(focal, axis=0, keepdims=True)      # (1, 128)

    # ---------------- modifiedTverskyLoss statistics ----------------
    zero = jnp.zeros_like(preds[0])
    tp_rows, sp_rows, sy_rows = [], [], []
    for c in range(1, C):                                   # foreground only
        p_c = preds[c]
        tp_rows.append(jnp.sum(jnp.where(ys[c], p_c, zero), axis=0, keepdims=True))
        sp_rows.append(jnp.sum(jnp.where(valid, p_c, zero), axis=0, keepdims=True))
        sy_rows.append(jnp.sum(ys[c].astype(jnp.float32), axis=0, keepdims=True))

    stats = jnp.concatenate(tp_rows + sp_rows + sy_rows + [focal_row], axis=0)
    out_ref[...] += stats[None, None]


def unified_focal_loss(logs, yb_oh=None, mask=None, *, gamma, delta,
                       eps=1e-5, scale=2.0, labels=None):
    """Pallas equivalent of unifiedFocalLoss.forward (mask=None path).

    Pass integer `labels` (N, *spatial) to skip the one-hot -> label argmax and
    its extra HBM read of the full one-hot tensor.
    """
    # TODO(synk): the reference mask path reshapes mask to (nb, nch, -1) and
    # multiplies with a (nb, nch-1, S) tensor, which does not broadcast for any
    # sensible mask shape; only the mask=None path is implemented.
    assert mask is None, "only mask=None is supported"

    N, C = logs.shape[:2]
    assert C >= 2
    S = int(np.prod(logs.shape[2:]))
    Cf = C - 1
    NR = 3 * Cf + 1

    if labels is None:
        assert yb_oh is not None and yb_oh.shape == logs.shape
        # TODO(synk): assumes yb_oh is a strict one-hot; all-zero "ignore" rows
        # are mapped to channel 0 (background), like the previous version.
        # Bool compare keeps the argmax reduction off the f32 path.
        labels = jnp.argmax(yb_oh.reshape(N, C, S) > 0.5, axis=1)
    lab_dtype = jnp.int8 if C <= 127 else jnp.int32
    labels = labels.reshape(N, S).astype(lab_dtype)
    logs3 = logs.reshape(N, C, S)                 # keep caller dtype (bf16 ok)

    # ----- lane-dense spatial tiling: (N, C, R, 128) -----
    lane = 128
    R = -(-S // lane)
    itemsize = jnp.dtype(logs.dtype).itemsize
    lab_itemsize = jnp.dtype(lab_dtype).itemsize
    # VMEM budget per 128-pixel row: double-buffered inputs + ~(3C+8) live f32
    # intermediate planes (zs/es/preds + softmax / focal temporaries).
    bytes_per_row = (2 * C * lane * itemsize + 2 * lane * lab_itemsize
                     + (3 * C + 8) * lane * 4)
    budget = 20 << 20
    r_cap = max(32, (budget // bytes_per_row) // 32 * 32)
    R_tile = int(min(r_cap, -(-R // 32) * 32))    # multiple of 32 (int8 tiling)
    n_tiles = -(-R // R_tile)
    G = 2 if n_tiles >= 2 else 1                  # spatial groups (2nd parallel axis)
    SR = -(-n_tiles // G)                         # S tiles per group
    R_pad = G * SR * R_tile
    S_pad = R_pad * lane

    if S_pad != S:
        pad = S_pad - S
        logs3 = jnp.pad(logs3, ((0, 0), (0, 0), (0, pad)))
        labels = jnp.pad(labels, ((0, 0), (0, pad)), constant_values=-1)
    logs4 = logs3.reshape(N, C, R_pad, lane)
    lab3 = labels.reshape(N, R_pad, lane)

    kernel = functools.partial(_ufl_kernel, gamma=float(gamma),
                               delta=float(delta), eps=float(eps))

    stats = pl.pallas_call(
        kernel,
        out_shape=jax.ShapeDtypeStruct((N, G, NR, lane), jnp.float32),
        grid_spec=pltpu.PrefetchScalarGridSpec(
            num_scalar_prefetch=0,
            grid=(N, G, SR),
            in_specs=[
                # NOTE: on v5e, sweeping pipeline_mode=pl.Buffered(3) on the
                # logits spec may hide per-tile DMA if it is exposed.
                pl.BlockSpec((1, C, R_tile, lane),
                             lambda n, g, s: (n, 0, g * SR + s, 0)),
                pl.BlockSpec((1, R_tile, lane),
                             lambda n, g, s: (n, g * SR + s, 0)),
            ],
            out_specs=pl.BlockSpec((1, 1, NR, lane),
                                   lambda n, g, s: (n, g, 0, 0)),
        ),
        compiler_params=pltpu.CompilerParams(
            dimension_semantics=("parallel", "parallel", "arbitrary"),
            vmem_limit_bytes=32 * 1024 * 1024),
    )(logs4, lab3)

    # ----- tiny finalize in plain JAX (reduce groups + lanes, Tversky, focal) -----
    stats = jnp.sum(stats, axis=(1, 3))                     # (N, 3*Cf + 1)
    tp = stats[:, 0:Cf]
    sp = stats[:, Cf:2 * Cf]
    sy = stats[:, 2 * Cf:3 * Cf]
    fsum = stats[:, 3 * Cf]

    fp = jnp.maximum(sp - tp, 0.0)                          # sum(p) - tp
    fn = jnp.maximum(sy - tp, 0.0)                          # sum(y) - tp
    mTI = (tp + eps) / (tp + delta * fp + (1.0 - delta) * fn + eps)
    tversky = jnp.mean(jnp.power(jnp.maximum(1.0 - mTI, 0.0), 1.0 - gamma))
    focal = -scale * jnp.sum(fsum) / (N * S)                # focal.sum(1).mean()
    return tversky + focal


def _reference_loss(logs, yb_oh, *, gamma, delta, eps=1e-5, scale=2.0):
    """Pure-JAX reference matching the PyTorch module (mask=None)."""
    pred = jax.nn.softmax(logs, axis=1)
    pred_c = jnp.clip(pred, eps, 1.0 - eps)
    logp = jax.nn.log_softmax(logs, axis=1)
    weight_bg = jnp.power(1.0 - pred_c[:, :1], gamma) * (1.0 - delta)
    focal_bg = -scale * weight_bg * yb_oh[:, :1] * logp[:, :1]
    focal_fg = -scale * delta * yb_oh[:, 1:] * logp[:, 1:]
    focal = jnp.concatenate([focal_bg, focal_fg], axis=1).sum(axis=1).mean()

    N, C = logs.shape[:2]
    p = pred.reshape(N, C, -1)[:, 1:]
    y = yb_oh.reshape(N, C, -1)[:, 1:]
    tp = jnp.sum(y * p, axis=2)
    fp = jnp.sum((1.0 - y) * p, axis=2)
    fn = jnp.sum((1.0 - p) * y, axis=2)
    mTI = (tp + eps) / (tp + delta * fp + (1.0 - delta) * fn + eps)
    tversky = jnp.power(1.0 - mTI, 1.0 - gamma).mean()
    return tversky + focal


if __name__ == "__main__":
    # unifiedFocalLoss(gamma, delta) hyper-parameters (deterministic, in-script)
    gamma, delta, eps, scale = 0.75, 0.6, 1e-5, 2.0

    N, C, H, W = 2, 4, 16, 16
    key = jax.random.PRNGKey(0)
    k_logs, k_lab = jax.random.split(key)

    logs = jax.random.normal(k_logs, (N, C, H, W), dtype=jnp.float32)
    labels = jax.random.randint(k_lab, (N, H, W), 0, C)
    yb_oh = jax.nn.one_hot(labels, C, dtype=jnp.float32)        # (N, H, W, C)
    yb_oh = jnp.transpose(yb_oh, (0, 3, 1, 2))                  # NCHW

    ref = _reference_loss(logs, yb_oh, gamma=gamma, delta=delta,
                          eps=eps, scale=scale)
    ref = jax.block_until_ready(ref)

    # spec-faithful path: one-hot target (argmax -> int8 labels in the wrapper)
    out = unified_focal_loss(logs, yb_oh, None,
                             gamma=gamma, delta=delta, eps=eps, scale=scale)
    out = jax.block_until_ready(out)
    np.testing.assert_allclose(np.asarray(out), np.asarray(ref),
                               rtol=1e-4, atol=1e-5)

    # fast path: caller-provided integer labels (skips the one-hot argmax read)
    out2 = unified_focal_loss(logs, None, None, gamma=gamma, delta=delta,
                              eps=eps, scale=scale, labels=labels)
    out2 = jax.block_until_ready(out2)
    np.testing.assert_allclose(np.asarray(out2), np.asarray(ref),
                               rtol=1e-4, atol=1e-5)

    print("KERNEL_OK")
</pallas_src>

<mosaic_0001>
module attributes {stable_mosaic.version = 11 : i64} {
  func.func @_ufl_kernel(%arg0: i32, %arg1: i32, %arg2: i32, %arg3: memref<1x4x32x128xf32, #tpu.memory_space<vmem>>, %arg4: memref<1x32x128xi8, #tpu.memory_space<vmem>>, %arg5: memref<1x1x10x128xf32, #tpu.memory_space<vmem>>) attributes {dimension_semantics = [#tpu.dimension_semantics<parallel>, #tpu.dimension_semantics<parallel>, #tpu.dimension_semantics<arbitrary>], iteration_bounds = array<i64: 2, 1, 1>, scalar_prefetch = 0 : i64, scratch_operands = 0 : i64, tpu.core_type = #tpu.core_type<tc>, window_params = [{transform_indices = @transform_0, window_bounds = array<i64: 1, 4, 32, 128>}, {transform_indices = @transform_1, window_bounds = array<i64: 1, 32, 128>}, {transform_indices = @transform_2, window_bounds = array<i64: 1, 1, 10, 128>}]} {
    %c0_i32 = arith.constant 0 : i32
    %0 = arith.cmpi eq, %arg2, %c0_i32 : i32
    %1 = arith.extui %0 : i1 to i32
    %c0_i32_0 = arith.constant 0 : i32
    %2 = arith.cmpi ne, %1, %c0_i32_0 : i32
    scf.if %2 {
      %cst_45 = arith.constant 0.000000e+00 : f32
      %104 = vector.broadcast %cst_45 : f32 to vector<1x1x10x128xf32>
      %c0_46 = arith.constant 0 : index
      %c0_47 = arith.constant 0 : index
      %c0_48 = arith.constant 0 : index
      %c0_49 = arith.constant 0 : index
      %105 = vector.load %arg5[%c0_46, %c0_47, %c0_48, %c0_49] : memref<1x1x10x128xf32, #tpu.memory_space<vmem>>, vector<1x1x10x128xf32>
      tpu.vector_store %arg5[%c0_46, %c0_47, %c0_48, %c0_49], %104 {strides = array<i32>} : memref<1x1x10x128xf32, #tpu.memory_space<vmem>>, vector<1x1x10x128xf32>,
    } else {
    }
    %c0 = arith.constant 0 : index
    %c0_1 = arith.constant 0 : index
    %c0_2 = arith.constant 0 : index
    %3 = vector.load %arg4[%c0, %c0_1, %c0_2] : memref<1x32x128xi8, #tpu.memory_space<vmem>>, vector<1x32x128xi8>
    %4 = vector.shape_cast %3 : vector<1x32x128xi8> to vector<32x128xi8>
    %5 = arith.extsi %4 : vector<32x128xi8> to vector<32x128xi32>
    %c0_i32_3 = arith.constant 0 : i32
    %6 = vector.broadcast %c0_i32_3 : i32 to vector<32x128xi32>
    %7 = arith.cmpi sge, %5, %6 : vector<32x128xi32>
    %c0_i32_4 = arith.constant 0 : i32
    %8 = vector.broadcast %c0_i32_4 : i32 to vector<32x128xi32>
    %9 = arith.cmpi eq, %5, %8 : vector<32x128xi32>
    %c1_i32 = arith.constant 1 : i32
    %10 = vector.broadcast %c1_i32 : i32 to vector<32x128xi32>
    %11 = arith.cmpi eq, %5, %10 : vector<32x128xi32>
    %c2_i32 = arith.constant 2 : i32
    %12 = vector.broadcast %c2_i32 : i32 to vector<32x128xi32>
    %13 = arith.cmpi eq, %5, %12 : vector<32x128xi32>
    %c3_i32 = arith.constant 3 : i32
    %14 = vector.broadcast %c3_i32 : i32 to vector<32x128xi32>
    %15 = arith.cmpi eq, %5, %14 : vector<32x128xi32>
    %c0_5 = arith.constant 0 : index
    %c0_6 = arith.constant 0 : index
    %c0_7 = arith.constant 0 : index
    %c0_8 = arith.constant 0 : index
    %16 = vector.load %arg3[%c0_5, %c0_6, %c0_7, %c0_8] : memref<1x4x32x128xf32, #tpu.memory_space<vmem>>, vector<1x1x32x128xf32>
    %17 = vector.shape_cast %16 : vector<1x1x32x128xf32> to vector<32x128xf32>
    %c0_9 = arith.constant 0 : index
    %c1 = arith.constant 1 : index
    %c0_10 = arith.constant 0 : index
    %c0_11 = arith.constant 0 : index
    %18 = vector.load %arg3[%c0_9, %c1, %c0_10, %c0_11] : memref<1x4x32x128xf32, #tpu.memory_space<vmem>>, vector<1x1x32x128xf32>
    %19 = vector.shape_cast %18 : vector<1x1x32x128xf32> to vector<32x128xf32>
    %c0_12 = arith.constant 0 : index
    %c2 = arith.constant 2 : index
    %c0_13 = arith.constant 0 : index
    %c0_14 = arith.constant 0 : index
    %20 = vector.load %arg3[%c0_12, %c2, %c0_13, %c0_14] : memref<1x4x32x128xf32, #tpu.memory_space<vmem>>, vector<1x1x32x128xf32>
    %21 = vector.shape_cast %20 : vector<1x1x32x128xf32> to vector<32x128xf32>
    %c0_15 = arith.constant 0 : index
    %c3 = arith.constant 3 : index
    %c0_16 = arith.constant 0 : index
    %c0_17 = arith.constant 0 : index
    %22 = vector.load %arg3[%c0_15, %c3, %c0_16, %c0_17] : memref<1x4x32x128xf32, #tpu.memory_space<vmem>>, vector<1x1x32x128xf32>
    %23 = vector.shape_cast %22 : vector<1x1x32x128xf32> to vector<32x128xf32>
    %24 = arith.maximumf %17, %19 : vector<32x128xf32>
    %25 = arith.maximumf %24, %21 : vector<32x128xf32>
    %26 = arith.maximumf %25, %23 : vector<32x128xf32>
    %27 = arith.subf %17, %26 : vector<32x128xf32>
    %28 = arith.subf %19, %26 : vector<32x128xf32>
    %29 = arith.subf %21, %26 : vector<32x128xf32>
    %30 = arith.subf %23, %26 : vector<32x128xf32>
    %31 = math.exp %27 : vector<32x128xf32>
    %32 = math.exp %28 : vector<32x128xf32>
    %33 = math.exp %29 : vector<32x128xf32>
    %34 = math.exp %30 : vector<32x128xf32>
    %35 = arith.addf %31, %32 : vector<32x128xf32>
    %36 = arith.addf %35, %33 : vector<32x128xf32>
    %37 = arith.addf %36, %34 : vector<32x128xf32>
    %cst = arith.constant 1.000000e+00 : f32
    %38 = vector.broadcast %cst : f32 to vector<32x128xf32>
    %39 = arith.divf %38, %37 : vector<32x128xf32>
    %40 = math.log %37 : vector<32x128xf32>
    %41 = arith.mulf %31, %39 : vector<32x128xf32>
    %42 = arith.mulf %32, %39 : vector<32x128xf32>
    %43 = arith.mulf %33, %39 : vector<32x128xf32>
    %44 = arith.mulf %34, %39 : vector<32x128xf32>
    %cst_18 = arith.constant 0.000000e+00 : f32
    %45 = vector.broadcast %cst_18 : f32 to vector<32x128xf32>
    %46 = arith.select %9, %27, %45 : vector<32x128xi1>, vector<32x128xf32>
    %47 = arith.select %11, %28, %46 : vector<32x128xi1>, vector<32x128xf32>
    %48 = arith.select %13, %29, %47 : vector<32x128xi1>, vector<32x128xf32>
    %49 = arith.select %15, %30, %48 : vector<32x128xi1>, vector<32x128xf32>
    %50 = arith.subf %49, %40 : vector<32x128xf32>
    %cst_19 = arith.constant 9.99999974E-6 : f32
    %cst_20 = arith.constant 0.999989986 : f32
    %51 = vector.broadcast %cst_19 : f32 to vector<32x128xf32>
    %52 = arith.maximumf %51, %41 : vector<32x128xf32>
    %53 = vector.broadcast %cst_20 : f32 to vector<32x128xf32>
    %54 = arith.minimumf %53, %52 : vector<32x128xf32>
    %cst_21 = arith.constant 1.000000e+00 : f32
    %55 = vector.broadcast %cst_21 : f32 to vector<32x128xf32>
    %56 = arith.subf %55, %54 : vector<32x128xf32>
    %cst_22 = arith.constant 7.500000e-01 : f32
    %57 = vector.broadcast %cst_22 : f32 to vector<32x128xf32>
    %58 = math.powf %56, %57 : vector<32x128xf32>
    %cst_23 = arith.constant 4.000000e-01 : f32
    %59 = vector.broadcast %cst_23 : f32 to vector<32x128xf32>
    %60 = arith.mulf %58, %59 : vector<32x128xf32>
    %cst_24 = arith.constant 6.000000e-01 : f32
    %61 = vector.broadcast %cst_24 : f32 to vector<32x128xf32>
    %62 = arith.select %9, %60, %61 : vector<32x128xi1>, vector<32x128xf32>
    %63 = arith.mulf %62, %50 : vector<32x128xf32>
    %cst_25 = arith.constant 0.000000e+00 : f32
    %64 = vector.broadcast %cst_25 : f32 to vector<32x128xf32>
    %65 = arith.select %7, %63, %64 : vector<32x128xi1>, vector<32x128xf32>
    %cst_26 = arith.constant dense<0.000000e+00> : vector<128xf32>
    %66 = vector.multi_reduction <add>, %65, %cst_26 [0] : vector<32x128xf32> to vector<128xf32>
    %67 = vector.shape_cast %66 : vector<128xf32> to vector<1x128xf32>
    %cst_27 = arith.constant 0.000000e+00 : f32
    %68 = vector.broadcast %cst_27 : f32 to vector<32x128xf32>
    %69 = arith.select %11, %42, %68 : vector<32x128xi1>, vector<32x128xf32>
    %cst_28 = arith.constant dense<0.000000e+00> : vector<128xf32>
    %70 = vector.multi_reduction <add>, %69, %cst_28 [0] : vector<32x128xf32> to vector<128xf32>
    %71 = vector.shape_cast %70 : vector<128xf32> to vector<1x128xf32>
    %72 = arith.select %7, %42, %68 : vector<32x128xi1>, vector<32x128xf32>
    %cst_29 = arith.constant dense<0.000000e+00> : vector<128xf32>
    %73 = vector.multi_reduction <add>, %72, %cst_29 [0] : vector<32x128xf32> to vector<128xf32>
    %74 = vector.shape_cast %73 : vector<128xf32> to vector<1x128xf32>
    %75 = arith.extui %11 : vector<32x128xi1> to vector<32x128xi32>
    %76 = arith.sitofp %75 : vector<32x128xi32> to vector<32x128xf32>
    %cst_30 = arith.constant dense<0.000000e+00> : vector<128xf32>
    %77 = vector.multi_reduction <add>, %76, %cst_30 [0] : vector<32x128xf32> to vector<128xf32>
    %78 = vector.shape_cast %77 : vector<128xf32> to vector<1x128xf32>
    %79 = arith.select %13, %43, %68 : vector<32x128xi1>, vector<32x128xf32>
    %cst_31 = arith.constant dense<0.000000e+00> : vector<128xf32>
    %80 = vector.multi_reduction <add>, %79, %cst_31 [0] : vector<32x128xf32> to vector<128xf32>
    %81 = vector.shape_cast %80 : vector<128xf32> to vector<1x128xf32>
    %82 = arith.select %7, %43, %68 : vector<32x128xi1>, vector<32x128xf32>
    %cst_32 = arith.constant dense<0.000000e+00> : vector<128xf32>
    %83 = vector.multi_reduction <add>, %82, %cst_32 [0] : vector<32x128xf32> to vector<128xf32>
    %84 = vector.shape_cast %83 : vector<128xf32> to vector<1x128xf32>
    %85 = arith.extui %13 : vector<32x128xi1> to vector<32x128xi32>
    %86 = arith.sitofp %85 : vector<32x128xi32> to vector<32x128xf32>
    %cst_33 = arith.constant dense<0.000000e+00> : vector<128xf32>
    %87 = vector.multi_reduction <add>, %86, %cst_33 [0] : vector<32x128xf32> to vector<128xf32>
    %88 = vector.shape_cast %87 : vector<128xf32> to vector<1x128xf32>
    %89 = arith.select %15, %44, %68 : vector<32x128xi1>, vector<32x128xf32>
    %cst_34 = arith.constant dense<0.000000e+00> : vector<128xf32>
    %90 = vector.multi_reduction <add>, %89, %cst_34 [0] : vector<32x128xf32> to vector<128xf32>
    %91 = vector.shape_cast %90 : vector<128xf32> to vector<1x128xf32>
    %92 = arith.select %7, %44, %68 : vector<32x128xi1>, vector<32x128xf32>
    %cst_35 = arith.constant dense<0.000000e+00> : vector<128xf32>
    %93 = vector.multi_reduction <add>, %92, %cst_35 [0] : vector<32x128xf32> to vector<128xf32>
    %94 = vector.shape_cast %93 : vector<128xf32> to vector<1x128xf32>
    %95 = arith.extui %15 : vector<32x128xi1> to vector<32x128xi32>
    %96 = arith.sitofp %95 : vector<32x128xi32> to vector<32x128xf32>
    %cst_36 = arith.constant dense<0.000000e+00> : vector<128xf32>
    %97 = vector.multi_reduction <add>, %96, %cst_36 [0] : vector<32x128xf32> to vector<128xf32>
    %98 = vector.shape_cast %97 : vector<128xf32> to vector<1x128xf32>
    %99 = tpu.concatenate %71, %81, %91, %74, %84, %94, %78, %88, %98, %67 in 0 : vector<1x128xf32>, vector<1x128xf32>, vector<1x128xf32>, vector<1x128xf32>, vector<1x128xf32>, vector<1x128xf32>, vector<1x128xf32>, vector<1x128xf32>, vector<1x128xf32>, vector<1x128xf32> -> vector<10x128xf32>
    %c0_37 = arith.constant 0 : index
    %c0_38 = arith.constant 0 : index
    %c0_39 = arith.constant 0 : index
    %c0_40 = arith.constant 0 : index
    %100 = vector.load %arg5[%c0_37, %c0_38, %c0_39, %c0_40] : memref<1x1x10x128xf32, #tpu.memory_space<vmem>>, vector<1x1x10x128xf32>
    %101 = vector.shape_cast %99 : vector<10x128xf32> to vector<1x1x10x128xf32>
    %102 = arith.addf %100, %101 : vector<1x1x10x128xf32>
    %c0_41 = arith.constant 0 : index
    %c0_42 = arith.constant 0 : index
    %c0_43 = arith.constant 0 : index
    %c0_44 = arith.constant 0 : index
    %103 = vector.load %arg5[%c0_41, %c0_42, %c0_43, %c0_44] : memref<1x1x10x128xf32, #tpu.memory_space<vmem>>, vector<1x1x10x128xf32>
    tpu.vector_store %arg5[%c0_41, %c0_42, %c0_43, %c0_44], %102 {strides = array<i32>} : memref<1x1x10x128xf32, #tpu.memory_space<vmem>>, vector<1x1x10x128xf32>,
    return
  }
  func.func @transform_0(%arg0: i32, %arg1: i32, %arg2: i32) -> (i32, i32, i32, i32) {
    %c1_i32 = arith.constant 1 : i32
    %0 = arith.muli %arg1, %c1_i32 : i32
    %1 = arith.addi %0, %arg2 : i32
    %c0_i32 = arith.constant 0 : i32
    %c0_i32_0 = arith.constant 0 : i32
    %c0_i32_1 = arith.constant 0 : i32
    return %arg0, %c0_i32, %1, %c0_i32_0 : i32, i32, i32, i32
  }
  func.func @transform_1(%arg0: i32, %arg1: i32, %arg2: i32) -> (i32, i32, i32) {
    %c1_i32 = arith.constant 1 : i32
    %0 = arith.muli %arg1, %c1_i32 : i32
    %1 = arith.addi %0, %arg2 : i32
    %c0_i32 = arith.constant 0 : i32
    %c0_i32_0 = arith.constant 0 : i32
    return %arg0, %1, %c0_i32 : i32, i32, i32
  }
  func.func @transform_2(%arg0: i32, %arg1: i32, %arg2: i32) -> (i32, i32, i32, i32) {
    %c0_i32 = arith.constant 0 : i32
    %c0_i32_0 = arith.constant 0 : i32
    %c0_i32_1 = arith.constant 0 : i32
    return %arg0, %arg1, %c0_i32, %c0_i32_0 : i32, i32, i32, i32
  }
}

</mosaic_0001>

<bundles_post_ra>
// kernel: tpu_custom_call.1
= control target key start
LH: loop header
LB: loop body
LE: loop exit
PB: predicated region body
PF: predicated region fallthrough
CT: control target
= control target key end

     0   :  { %7 = vsyncpa [#allocation3], 0  ;;  %s1695_s0 = inlined_call_operand.hbm [shape: f32[2,4,32,128], index: 0, kind: input, shape index: {}]   ;;  %s1696_s1 = inlined_call_operand.hbm [shape: s8[2,32,128], index: 1, kind: input, shape index: {}]   ;;  %s1697_s2 = inlined_call_operand.vmem [shape: f32[2,1,10,128], index: 2, kind: output, shape index: {}]  }
   0x1   :  { %9 = vsyncpa [#allocation3 + $0x1], 0 }
   0x2   :  { %10 = vsyncpa [#allocation5], 0 }
   0x3   :  { %12 = vsyncpa [#allocation5 + $0x1], 0  ;;  %s1107_s9 = smov 0   ;;  %s1109_s10 = smov 0  }
   0x4   :  { %s1111_s11 = smov 0   ;;  %s1113_s12 = smov 0  }
   0x5   :  { %s1115_s13 = smov 0   ;;  %s1117_s14 = smov 0  }
   0x6 LB: > { %s738_s15 = sadd.s32 4294967295, %s1085_s14   ;;  %s37_s16 = sadd.s32 1, %s1081_s13  ;;  %s1085_s14 = sphi %s1117_s14, %s18_s14   ;;  %s1081_s13 = sphi %s1115_s13, %s1740_s13   ;;  %s1077_s12 = sphi %s1113_s12, %s1739_s12   ;;  %s1073_s11 = sphi %s1111_s11, %s1738_s11   ;;  %s1069_s10 = sphi %s1109_s10, %s1737_s10   ;;  %s1065_s9 = sphi %s1107_s9, %s1736_s9  }
   0x7   : > { %p39_p0 = scmp.ge.s32.totalorder %s37_s16, 2  ;;  %s48_s17 = sadd.s32 1, %s1073_s11 }
   0x8   : > { %p55_p1 = scmp.ne.s32.totalorder %s1073_s11, %s1069_s10  ;;  %p56_p2 = scmp.eq.s32.totalorder %s1085_s14, 0 }
   0x9   : > { %s1742_s16 = smov (%p39_p0, %s37_s16), 0  ;;  %p61_p4 = scmp.ne.s32.totalorder %s1069_s10, %s1065_s9 }
   0xa   : > { %p1143_p3 = por %p56_p2, %p55_p1  ;;  %s43_s19 = ssub.s32 %s1081_s13, %s1742_s16 }
   0xb   : > { %p62_p5 = scmp.eq.s32.totalorder %s738_s15, 0  ;;  %p46_p6 = scmp.eq.s32.totalorder %s43_s19, 0 }
   0xc   : > { %p855_p8 = scmp.lt.s32.totalorder %s1085_s14, 2  ;;  %s1159_s22 = sand.u32 1, %s1073_s11  }
   0xd   : > { %p1150_p7 = por %p62_p5, %p61_p4  ;;  %s778_s23 = sshll.u32 %s1081_s13, 11 }
   0xe   : > { %s1156_s21 = scalar_select %p46_p6, %s1073_s11, %s48_s17  }
   0xf   : > { %s1710_s20 = scalar_select %p1150_p7, 1, 0 }
  0x10   : > { %s742_s24 = sshll.u32 %s1159_s22, 7  ;;  %s1166_s27 = scalar_lea.hbm %s1695_s0, %s778_s23 }
  0x11   : > { %s147_s28 = scalar_lea.vmem [#allocation2], %s742_s24  ;;  %p1170_p9 = pnand %p855_p8, %p1143_p3 }
  0x12   : > { %s157_s29 = sshll.u32 %s147_s28, 4  ;;  %s144_s3 = scalar_lea.sflag [#allocation3], %s1159_s22  ;;  %s1174_s29 = int_to_ptr.vmem [resolvable:$true] %s157_s29 }
  0x13   : > { %s971_s4 = scalar_lea.hbm %s1166_s27, 2048  ;;  %p973_p11 = pneg %p1170_p9 }
  0x14   : > { %p972_p10 = scmp.ne.s32.totalorder %s1166_s27, %s971_s4  ;;  %s976_s7 = scalar_lea.hbm %s1695_s0, 4096 }
  0x15   : > { %p977_p0 = scmp.lt.u32.totalorder %s1166_s27, %s1695_s0  ;;  %p978_p1 = scmp.lt.u32.totalorder %s976_s7, %s971_s4 }
  0x16   : > { %p974_p12 = pnand %p973_p11, %p972_p10  ;;  %p980_p3 = scmp.lt.u32.totalorder %s971_s4, %s1166_s27 }
  0x17   : > { %p979_p2 = por %p978_p1, %p977_p0 }
  0x18   : > { %p975_p13 = pneg %p974_p12 }
  0x19   : > { %p981_p4 = por %p980_p3, %p979_p2 }
  0x1b   : > { %p982_p5 = pnand %p981_p4, %p975_p13 }
  0x1d   : > { %985 = shalt.err (!%p982_p5)
}
  0x1e   : > { %s986_s15 = scalar_lea.vmem %s1174_s29, 2048  ;;  %s1087_s17 = smov [#allocation2]  }
  0x1f   : > { %p987_p6 = scmp.ne.s32.totalorder %s1174_s29, %s986_s15  ;;  %s991_s18 = sshll.u32 %s1087_s17, 4  ;;  %s992_s18 = int_to_ptr.vmem [resolvable:$false] %s991_s18 }
  0x20   : > { %s993_s19 = scalar_lea.vmem %s992_s18, 4096  ;;  %p994_p12 = scmp.lt.s32.totalorder %s1174_s29, %s992_s18 }
  0x21   : > { %p989_p8 = pnand %p987_p6, %p973_p11  ;;  %p995_p0 = scmp.lt.s32.totalorder %s993_s19, %s986_s15 }
  0x23   : > { %p990_p10 = pneg %p989_p8  ;;  %p996_p1 = por %p995_p0, %p994_p12 }
  0x25   : > { %p997_p2 = pnand %p996_p1, %p990_p10 }
  0x27   : > { %1000 = shalt.err (!%p997_p2)
}
  0x28   : > { %s1088_s23 = smov 128   ;;  %s1089_s24 = smov 8  }
  0x29   : > { %851 = dma.hbm_to_vmem [thread:$0]  (!%p1170_p9), %s1166_s27, 2048, %s1174_s29, %s144_s3, %s1088_s23, %s1088_s23, %s1089_s24  }
  0x2a   : > { %p747_p13 = scmp.ge.s32.totalorder %s1085_s14, 1  ;;  %p185_p3 = scmp.lt.s32.totalorder %s1085_s14, 3 }
  0x2b   : > { %s745_s25 = sshll.u32 %s1159_s22, 3  ;;  %s746_s28 = sshll.u32 %s1081_s13, 7 }
  0x2c   : > { %p1207_p4 = pnand %p747_p13, %p185_p3  ;;  %s171_s4 = scalar_lea.vmem [#allocation4], %s745_s25 }
  0x2d   : > { %s180_s5 = sshll.u32 %s171_s4, 4  ;;  %s1215_s8 = scalar_lea.hbm %s1696_s1, %s746_s28  ;;  %s181_s5 = int_to_ptr.vmem [resolvable:$true] %s180_s5 }
  0x2e   : > { %s1712_s26 = scalar_select %p1207_p4, 1, 0 }
  0x2f   : > { %s168_s27 = scalar_lea.sflag [#allocation5], %s1159_s22  ;;  %s1001_s29 = scalar_lea.hbm %s1215_s8, 128 }
  0x30   : > { %p1002_p5 = scmp.ne.s32.totalorder %s1215_s8, %s1001_s29  ;;  %s1006_s15 = scalar_lea.hbm %s1696_s1, 256 }
  0x31   : > { %p1007_p10 = scmp.lt.u32.totalorder %s1215_s8, %s1696_s1  ;;  %p1008_p12 = scmp.lt.u32.totalorder %s1006_s15, %s1001_s29 }
  0x32   : > { %p1004_p6 = pnand %p1002_p5, %p973_p11  ;;  %p1010_p1 = scmp.lt.u32.totalorder %s1001_s29, %s1215_s8 }
  0x33   : > { %p1009_p0 = por %p1008_p12, %p1007_p10 }
  0x34   : > { %p1005_p8 = pneg %p1004_p6 }
  0x35   : > { %p1011_p2 = por %p1010_p1, %p1009_p0 }
  0x37   : > { %p1012_p13 = pnand %p1011_p2, %p1005_p8 }
  0x39   : > { %1015 = shalt.err (!%p1012_p13)
}
  0x3a   : > { %s1016_s22 = scalar_lea.vmem %s181_s5, 128  ;;  %s1090_s19 = smov [#allocation4]  }
  0x3b   : > { %p1017_p3 = scmp.ne.s32.totalorder %s181_s5, %s1016_s22  ;;  %s1021_s23 = sshll.u32 %s1090_s19, 4  ;;  %s1022_s23 = int_to_ptr.vmem [resolvable:$false] %s1021_s23 }
  0x3c   : > { %s1023_s24 = scalar_lea.vmem %s1022_s23, 256  ;;  %p1024_p7 = scmp.lt.s32.totalorder %s181_s5, %s1022_s23 }
  0x3d   : > { %p1019_p5 = pnand %p1017_p3, %p973_p11  ;;  %p1025_p4 = scmp.lt.s32.totalorder %s1023_s24, %s1016_s22 }
  0x3f   : > { %p1020_p6 = pneg %p1019_p5  ;;  %p1026_p10 = por %p1025_p4, %p1024_p7 }
  0x41   : > { %p1027_p12 = pnand %p1026_p10, %p1020_p6 }
  0x43   : > { %1030 = shalt.err (!%p1027_p12)
}
  0x44   : > { %854 = dma.hbm_to_vmem [thread:$0]  (!%p1170_p9), %s1215_s8, 128, %s181_s5, %s168_s27  }
  0x45   : > { %p1713_p8 = scmp.ne.s32.totalorder %s1712_s26, 0 }
  0x46   : > { %s191_s25 = sand.u32 (!%p1713_p8), 1, %s1069_s10   ;;  %p1714_p11 = scmp.ne.s32.totalorder (!%p1713_p8), %s1710_s20, 0 }
  0x47   : > { %189 = sbr.rel (%p1713_p8) target bundleno = 207 (0xcf), region = 28  ;;  %s748_s28 = sshll.u32 (!%p1713_p8), %s191_s25, 7 }
  0x48   : > { %s192_s4 = scalar_lea.sflag (!%p1713_p8), [#allocation3], %s191_s25  ;;  %s1240_s6 = scalar_lea.vmem (!%p1713_p8), [#allocation2], %s748_s28 }
  0x4e   : > { %1056 = dma.done.wait (%p1714_p11), %s192_s4, 2048  }
  0x4f   : > { %1058 = vsyncadd (%p1714_p11), %s192_s4, 4294965248  ;;  %s749_s7 = sshll.u32 %s191_s25, 3  ;;  %s201_s30 = scalar_lea.sflag [#allocation5], %s191_s25 }
  0x50   : > { %s204_s29 = scalar_lea.vmem [#allocation4], %s749_s7 }
  0x51   : > { %1060 = dma.done.wait (%p1714_p11), %s201_s30, 128  }
  0x52   : > { %1062 = vsyncadd (%p1714_p11), %s201_s30, 4294967168  ;;  %p237_p7 = scmp.lt.s32.totalorder %s1077_s12, 1  ;;  %v1091_v0 = vmov 0.0   ;;  %v277_v1 = vld [vmem:[%s1240_s6] sm:$0xff]  ;;  %v278_v4 = vld [vmem:[%s1240_s6 + $0x8] sm:$0xff] }
  0x53   : > { %v752_v2 = vld [vmem:[%s1240_s6 + $0x20] sm:$0xff]  ;;  %v279_v5 = vld [vmem:[%s1240_s6 + $0x10] sm:$0xff]  ;;  %v280_v6 = vld [vmem:[%s1240_s6 + $0x18] sm:$0xff] }
  0x54   : > { %s1744_s12 = smov (!%p237_p7, %s1077_s12), 1  ;;  %v252_v3 = vld [vmem:[%s204_s29] sm:$0xff]  ;;  %v296_v8 = vmax.f32 %v277_v1, %v752_v2  ;;  %v754_v9 = vld [vmem:[%s1240_s6 + $0x30] sm:$0xff]  ;;  %v755_v10 = vld [vmem:[%s1240_s6 + $0x38] sm:$0xff] }
  0x55   : > { %s779_s26 = sshll.u32 %s1744_s12, 4  ;;  %v753_v7 = vld [vmem:[%s1240_s6 + $0x28] sm:$0xff]  ;;  %v756_v11 = vld [vmem:[%s1240_s6 + $0x40] sm:$0xff]  ;;  %v1269_v13 = vunpack.c.0.s8 %v252_v3  ;;  %v1271_v14 = vunpack.c.1.s8 %v252_v3  ;;  %v1273_v15 = vunpack.c.2.s8 %v252_v3  ;;  %v1275_v16 = vunpack.c.3.s8 %v252_v3  ;;  %v758_v17 = vld [vmem:[%s1240_s6 + $0x50] sm:$0xff] }
  0x56   : > { %s1255_s20 = scalar_lea.vmem %s1697_s2, %s779_s26  ;;  %v757_v12 = vld [vmem:[%s1240_s6 + $0x48] sm:$0xff]  ;;  %v759_v18 = vld [vmem:[%s1240_s6 + $0x58] sm:$0xff]  ;;  %v760_v19 = vld [vmem:[%s1240_s6 + $0x60] sm:$0xff]  ;;  %v297_v20 = vmax.f32 %v278_v4, %v753_v7  ;;  %v298_v21 = vmax.f32 %v279_v5, %v754_v9  ;;  %v299_v22 = vmax.f32 %v280_v6, %v755_v10  ;;  %v300_v23 = vmax.f32 %v296_v8, %v756_v11 }
  0x57   : > { %251 = vst [vmem:[%s1255_s20 + $0x8] sm:$0x3] %v1091_v0  ;;  %v761_v24 = vld [vmem:[%s1240_s6 + $0x68] sm:$0xff]  ;;  %v762_v25 = vld [vmem:[%s1240_s6 + $0x70] sm:$0xff]  ;;  %v763_v26 = vld [vmem:[%s1240_s6 + $0x78] sm:$0xff]  ;;  %vm1702_vm0 = vcmp.eq.s32.totalorder %v1269_v13, 0 }
  0x58   : > { %v301_v27 = vmax.f32 %v297_v20, %v757_v12  ;;  %v302_v28 = vmax.f32 %v298_v21, %v758_v17  ;;  %v303_v29 = vmax.f32 %v299_v22, %v759_v18  ;;  %v304_v30 = vmax.f32 %v300_v23, %v760_v19 }
  0x59   : > { %vm1701_vm1 = vcmp.eq.s32.totalorder %v1271_v14, 0  ;;  %vm1700_vm2 = vcmp.eq.s32.totalorder %v1273_v15, 0  ;;  %vm1699_vm3 = vcmp.eq.s32.totalorder %v1275_v16, 0  ;;  %vm265_vm4 = vcmp.eq.s32.totalorder %v1269_v13, 1 }
  0x5a   : > { %v305_v31 = vmax.f32 %v301_v27, %v761_v24  ;;  %v306_v32 = vmax.f32 %v302_v28, %v762_v25  ;;  %v307_v33 = vmax.f32 %v303_v29, %v763_v26  ;;  %vm266_vm5 = vcmp.eq.s32.totalorder %v1271_v14, 1 }
  0x5b   : > { %vm267_vm6 = vcmp.eq.s32.totalorder %v1273_v15, 1  ;;  %vm268_vm7 = vcmp.eq.s32.totalorder %v1275_v16, 1  ;;  %v308_v34 = vsub.f32 %v277_v1, %v304_v30  ;;  %vm269_vm8 = vcmp.eq.s32.totalorder %v1269_v13, 2 }
  0x5c   : > { %vm270_vm9 = vcmp.eq.s32.totalorder %v1271_v14, 2  ;;  %vm271_vm10 = vcmp.eq.s32.totalorder %v1273_v15, 2  ;;  %v309_v35 = vsub.f32 %v278_v4, %v305_v31  ;;  %v310_v36 = vsub.f32 %v279_v5, %v306_v32 }
  0x5d   : > { %v311_v37 = vsub.f32 %v280_v6, %v307_v33  ;;  %vm272_vm11 = vcmp.eq.s32.totalorder %v1275_v16, 2  ;;  %vm273_vm12 = vcmp.eq.s32.totalorder %v1269_v13, 3  ;;  %vm1705_vm13 = vcmp.eq.s32.totalorder %v1271_v14, 3 }
  0x5e   : > { %v312_v38 = vsub.f32 %v752_v2, %v304_v30  ;;  %v316_v39 = vsub.f32 %v756_v11, %v304_v30  ;;  %vm1704_vm14 = vcmp.eq.s32.totalorder %v1273_v15, 3  ;;  %vm1703_vm15 = vcmp.eq.s32.totalorder %v1275_v16, 3 }
  0x5f   : > { %v313_v40 = vsub.f32 %v753_v7, %v305_v31  ;;  %v314_v41 = vsub.f32 %v754_v9, %v306_v32  ;;  %v315_v42 = vsub.f32 %v755_v10, %v307_v33  ;;  %v317_v43 = vsub.f32 %v757_v12, %v305_v31 }
  0x60   : > { %v318_v44 = vsub.f32 %v758_v17, %v306_v32  ;;  %v324_v45 = vmul.f32 1.442695, %v308_v34  ;;  %v326_v46 = vmul.f32 1.442695, %v309_v35  ;;  %v328_v47 = vmul.f32 1.442695, %v310_v36 }
  0x61   : > { %v319_v48 = vsub.f32 %v759_v18, %v307_v33  ;;  %v320_v49 = vsub.f32 %v760_v19, %v304_v30  ;;  %v321_v50 = vsub.f32 %v761_v24, %v305_v31  ;;  %v330_v51 = vmul.f32 1.442695, %v311_v37 }
  0x62   : > { %v322_v52 = vsub.f32 %v762_v25, %v306_v32  ;;  %v323_v53 = vsub.f32 %v763_v26, %v307_v33  ;;  %907 = vpow2.f32 %v324_v45  ;;  %v332_v54 = vmul.f32 1.442695, %v312_v38 }
  0x63   : > { %909 = vpow2.f32 %v326_v46  ;;  %v334_v55 = vmul.f32 1.442695, %v313_v40  ;;  %v336_v56 = vmul.f32 1.442695, %v314_v41  ;;  %v338_v57 = vmul.f32 1.442695, %v315_v42 }
  0x64   : > { %911 = vpow2.f32 %v328_v47  ;;  %v340_v58 = vmul.f32 1.442695, %v316_v39  ;;  %v342_v59 = vmul.f32 1.442695, %v317_v43  ;;  %v344_v60 = vmul.f32 1.442695, %v318_v44 }
  0x65   : > { %913 = vpow2.f32 %v330_v51  ;;  %v346_v61 = vmul.f32 1.442695, %v319_v48  ;;  %v400_v62 = vsel %vm1702_vm0, %v308_v34, 0.0  ;;  %v401_v63 = vsel %vm1701_vm1, %v309_v35, 0.0 }
  0x66   : > { %915 = vpow2.f32 %v332_v54  ;;  %v402_v1 = vsel %vm1700_vm2, %v310_v36, 0.0  ;;  %v403_v2 = vsel %vm1699_vm3, %v311_v37, 0.0  ;;  %v404_v3 = vsel %vm265_vm4, %v312_v38, %v400_v62 }
  0x67   : > { %917 = vpow2.f32 %v334_v55  ;;  %v405_v4 = vsel %vm266_vm5, %v313_v40, %v401_v63  ;;  %v406_v5 = vsel %vm267_vm6, %v314_v41, %v402_v1  ;;  %v407_v6 = vsel %vm268_vm7, %v315_v42, %v403_v2 }
  0x68   : > { %919 = vpow2.f32 %v336_v56  ;;  %v408_v7 = vsel %vm269_vm8, %v316_v39, %v404_v3  ;;  %v409_v8 = vsel %vm270_vm9, %v317_v43, %v405_v4  ;;  %v410_v9 = vsel %vm271_vm10, %v318_v44, %v406_v5 }
  0x69   : > { %921 = vpow2.f32 %v338_v57  ;;  %v411_v10 = vsel %vm272_vm11, %v319_v48, %v407_v6  ;;  %v1325_v11 = vsel %vm273_vm12, %v320_v49, %v408_v7  ;;  %v1329_v12 = vsel %vm1705_vm13, %v321_v50, %v409_v8 }
  0x6a   : > { %923 = vpow2.f32 %v340_v58  ;;  %v348_v17 = vmul.f32 1.442695, %v320_v49  ;;  %v1333_v18 = vsel %vm1704_vm14, %v322_v52, %v410_v9  ;;  %v1337_v19 = vsel %vm1703_vm15, %v323_v53, %v411_v10 }
  0x6b   : > { %925 = vpow2.f32 %v342_v59  ;;  %v350_v20 = vmul.f32 1.442695, %v321_v50  ;;  %v764_v21 = vsel %vm265_vm4, 1.0, %v1091_v0  ;;  %v765_v22 = vsel %vm266_vm5, 1.0, %v1091_v0 }
  0x6c   : > { %v1345_v23 = vpop.eup %907  ;;  %927 = vpow2.f32 %v344_v60  ;;  %v352_v24 = vmul.f32 1.442695, %v322_v52  ;;  %v354_v26 = vmul.f32 1.442695, %v323_v53  ;;  %v495_v28 = vadd.f32 %v765_v22, %v764_v21 }
  0x6d   : > { %v1347_v25 = vpop.eup %909  ;;  %929 = vpow2.f32 %v346_v61  ;;  %v766_v30 = vsel %vm267_vm6, 1.0, %v1091_v0  ;;  %v768_v31 = vsel %vm269_vm8, 1.0, %v1091_v0  ;;  %v769_v32 = vsel %vm270_vm9, 1.0, %v1091_v0 }
  0x6e   : > { %v1349_v27 = vpop.eup %911  ;;  %931 = vpow2.f32 %v348_v17  ;;  %v496_v38 = vadd.f32 %v766_v30, %v495_v28  ;;  %v538_v39 = vadd.f32 %v769_v32, %v768_v31  ;;  %v767_v42 = vsel %vm268_vm7, 1.0, %v1091_v0 }
  0x6f   : > { %v1351_v29 = vpop.eup %913  ;;  %933 = vpow2.f32 %v350_v20  ;;  %v770_v43 = vsel %vm271_vm10, 1.0, %v1091_v0  ;;  %v771_v54 = vsel %vm272_vm11, 1.0, %v1091_v0  ;;  %v772_v57 = vsel %vm273_vm12, 1.0, %v1091_v0 }
  0x70   : > { %v1362_v33 = vpop.eup %915  ;;  %935 = vpow2.f32 %v352_v24  ;;  %v497_v50 = vadd.f32 %v767_v42, %v496_v38  ;;  %v539_v51 = vadd.f32 %v770_v43, %v538_v39  ;;  %v773_v58 = vsel %vm1705_vm13, 1.0, %v1091_v0 }
  0x71   : > { %v1364_v34 = vpop.eup %917  ;;  %937 = vpow2.f32 %v354_v26  ;;  %v356_v35 = vadd.f32 %v1362_v33, %v1345_v23  ;;  %v581_v4 = vadd.f32 %v773_v58, %v772_v57  ;;  %v774_v6 = vsel %vm1704_vm14, 1.0, %v1091_v0 }
  0x72   : > { %v1368_v36 = vpop.eup %919  ;;  %v357_v37 = vadd.f32 %v1364_v34, %v1347_v25  ;;  %v498_v63 = vrot.slane %v497_v50, 4  ;;  %v540_v1 = vadd.f32 %v771_v54, %v539_v51  ;;  %v775_v10 = vsel %vm1703_vm15, 1.0, %v1091_v0 }
  0x73   : > { %v1372_v40 = vpop.eup %921  ;;  %v358_v41 = vadd.f32 %v1368_v36, %v1349_v27  ;;  %v582_v9 = vadd.f32 %v774_v6, %v581_v4  ;;  %vm257_vm3 = vcmp.ge.s32.totalorder %v1269_v13, 0  ;;  %vm1708_vm2 = vcmp.ge.s32.totalorder %v1271_v14, 0 }
  0x74   : > { %v1382_v44 = vpop.eup %923  ;;  %v359_v45 = vadd.f32 %v1372_v40, %v1351_v29  ;;  %v499_v7 = vadd.f32 %v498_v63, %v497_v50  ;;  %v541_v8 = vrot.slane %v540_v1, 4  ;;  %vm1706_vm1 = vcmp.ge.s32.totalorder %v1273_v15, 0 }
  0x75   : > { %v1386_v46 = vpop.eup %925  ;;  %v360_v47 = vadd.f32 %v1382_v44, %v356_v35  ;;  %v583_v21 = vadd.f32 %v775_v10, %v582_v9  ;;  %vm1707_vm0 = vcmp.ge.s32.totalorder %v1275_v16, 0 }
  0x76   : > { %v1389_v48 = vpop.eup %927  ;;  %v361_v49 = vadd.f32 %v1386_v46, %v357_v37  ;;  %v500_v17 = vrot.slane %v499_v7, 2  ;;  %v542_v20 = vadd.f32 %v541_v8, %v540_v1 }
  0x77   : > { %v1392_v52 = vpop.eup %929  ;;  %v362_v53 = vadd.f32 %v1389_v48, %v358_v41  ;;  %v584_v35 = vrot.slane %v583_v21, 4 }
  0x78   : > { %v932_v55 = vpop.eup %931  ;;  %v363_v56 = vadd.f32 %v1392_v52, %v359_v45  ;;  %v1421_v28 = vadd.f32 %v500_v17, %v499_v7  ;;  %v543_v30 = vrot.slane %v542_v20, 2 }
  0x79   : > { %v1405_v59 = vpop.eup %933  ;;  %v364_v60 = vadd.f32 %v932_v55, %v360_v47 }
  0x7a   : > { %v1407_v61 = vpop.eup %935  ;;  %v365_v62 = vadd.f32 %v1405_v59, %v361_v49  ;;  %v502_v45 = vrot.slane %v1421_v28, 1  ;;  %v1427_v47 = vadd.f32 %v543_v30, %v542_v20 }
  0x7b   : > { %v1410_v2 = vpop.eup %937  ;;  %v366_v3 = vadd.f32 %v1407_v61, %v362_v53  ;;  %939 = vrcp.f32 %v364_v60 }
  0x7c   : > { %v367_v5 = vadd.f32 %v1410_v2, %v363_v56  ;;  %941 = vrcp.f32 %v365_v62 }
  0x7d   : > { %943 = vrcp.f32 %v366_v3 }
  0x7e   : > { %945 = vrcp.f32 %v367_v5 }
  0x7f   : > { %947 = vlog2.f32 %v364_v60 }
  0x80   : > { %949 = vlog2.f32 %v365_v62 }
  0x81   : > { %951 = vlog2.f32 %v366_v3 }
  0x82   : > { %953 = vlog2.f32 %v367_v5 }
  0x85   : > { %v940_v22 = vpop.eup %939 }
  0x86   : > { %v942_v24 = vpop.eup %941  ;;  %v384_v26 = vmul.f32 %v940_v22, %v1345_v23  ;;  %v388_v49 = vmul.f32 %v940_v22, %v1362_v33 }
  0x87   : > { %v944_v31 = vpop.eup %943  ;;  %v385_v32 = vmul.f32 %v942_v24, %v1347_v25  ;;  %v1430_v25 = vadd.f32 %v584_v35, %v583_v21  ;;  %v389_v58 = vmul.f32 %v942_v24, %v1364_v34  ;;  %v393_v4 = vmul.f32 %v942_v24, %v1386_v46 }
  0x88   : > { %v946_v37 = vpop.eup %945  ;;  %v386_v38 = vmul.f32 %v944_v31, %v1349_v27  ;;  %v420_v42 = vmax.f32 %v384_v26, 1e-05  ;;  %v1434_v27 = vmul.f32 %v940_v22, %v1382_v44  ;;  %v390_v3 = vmul.f32 %v944_v31, %v1368_v36 }
  0x89   : > { %v948_v0 = vpop.eup %947  ;;  %v387_v39 = vmul.f32 %v946_v37, %v1351_v29  ;;  %v421_v43 = vmax.f32 %v385_v32, 1e-05  ;;  %v1436_v29 = vmul.f32 %v940_v22, %v932_v55  ;;  %v1457_v5 = vmul.f32 %v942_v24, %v1405_v59 }
  0x8a   : > { %v950_v41 = vpop.eup %949  ;;  %v422_v50 = vmax.f32 %v386_v38, 1e-05  ;;  %v424_v54 = vmin.f32 %v420_v42, 0.99999  ;;  %v1441_v33 = vmul.f32 0.6931472, %v948_v0  ;;  %v394_v6 = vmul.f32 %v944_v31, %v1389_v48 }
  0x8b   : > { %v952_v23 = vpop.eup %951  ;;  %v423_v51 = vmax.f32 %v387_v39, 1e-05  ;;  %v425_v56 = vmin.f32 %v421_v43, 0.99999  ;;  %v1443_v57 = vmul.f32 0.6931472, %v950_v41  ;;  %v1461_v34 = vmul.f32 %v944_v31, %v1407_v61 }
  0x8c   : > { %v954_v53 = vpop.eup %953  ;;  %v426_v60 = vmin.f32 %v422_v50, 0.99999  ;;  %v1446_v62 = vmul.f32 0.6931472, %v952_v23  ;;  %v1448_v55 = vsub.f32 1.0, %v424_v54  ;;  %v391_v8 = vmul.f32 %v946_v37, %v1372_v40 }
  0x8d   : > { %v427_v44 = vmin.f32 %v423_v51, 0.99999  ;;  %v1450_v63 = vsub.f32 1.0, %v425_v56  ;;  %v1452_v1 = vmul.f32 0.6931472, %v954_v53  ;;  %v395_v9 = vmul.f32 %v946_v37, %v1392_v52 }
  0x8e   : > { %v1463_v7 = vsub.f32 1.0, %v426_v60  ;;  %955 = vrsqrt.f32 %v1448_v55  ;;  %v1469_v36 = vmul.f32 %v946_v37, %v1410_v2  ;;  %v416_v46 = vsub.f32 %v1325_v11, %v1441_v33 }
  0x8f   : > { %v417_v48 = vsub.f32 %v1329_v12, %v1443_v57  ;;  %v418_v59 = vsub.f32 %v1333_v18, %v1446_v62  ;;  %v1477_v61 = vsub.f32 1.0, %v427_v44  ;;  %957 = vrsqrt.f32 %v1450_v63 }
  0x90   : > { %v419_v40 = vsub.f32 %v1337_v19, %v1452_v1  ;;  %v461_v52 = vsel %vm265_vm4, %v388_v49, 0.0  ;;  %v462_v2 = vsel %vm266_vm5, %v389_v58, 0.0  ;;  %v782_v10 = vand.u32 2147483647, %v1448_v55 }
  0x91   : > { %vm786_vm14 = vcmp.eq.f32.partialorder %v1448_v55, inf  ;;  %v789_v17 = vand.u32 2147483648, %v1448_v55  ;;  %959 = vrsqrt.f32 %v1463_v7  ;;  %vm796_vm13 = vcmp.eq.f32.partialorder %v1450_v63, 0.0 }
  0x92   : > { %v798_v20 = vand.u32 2147483647, %v1450_v63  ;;  %vm802_vm15 = vcmp.eq.f32.partialorder %v1450_v63, inf  ;;  %v805_v21 = vand.u32 2147483648, %v1450_v63  ;;  %v821_v22 = vand.u32 2147483648, %v1463_v7 }
  0x93   : > { %961 = vrsqrt.f32 %v1477_v61  ;;  %v463_v24 = vsel %vm267_vm6, %v390_v3, 0.0  ;;  %vm812_vm5 = vcmp.eq.f32.partialorder %v1463_v7, 0.0  ;;  %v837_v26 = vand.u32 2147483648, %v1477_v61 }
  0x94   : > { %v464_v30 = vsel %vm268_vm7, %v391_v8, 0.0  ;;  %v465_v31 = vadd.f32 %v462_v2, %v461_v52  ;;  %v474_v32 = vsel %vm257_vm3, %v388_v49, 0.0  ;;  %vm834_vm4 = vcmp.eq.f32.partialorder %v1477_v61, inf }
  0x95   : > { %v475_v35 = vsel %vm1708_vm2, %v389_v58, 0.0  ;;  %v476_v37 = vsel %vm1706_vm1, %v390_v3, 0.0  ;;  %v477_v38 = vsel %vm1707_vm0, %v391_v8, 0.0  ;;  %v504_v0 = vsel %vm269_vm8, %v1434_v27, 0.0 }
  0x96   : > { %vm828_vm6 = vcmp.eq.f32.partialorder %v1477_v61, 0.0  ;;  %v466_v39 = vadd.f32 %v465_v31, %v463_v24  ;;  %v478_v41 = vadd.f32 %v475_v35, %v474_v32  ;;  %v505_v42 = vsel %vm270_vm9, %v393_v4, 0.0 }
  0x97   : > { %v506_v43 = vsel %vm271_vm10, %v394_v6, 0.0  ;;  %v507_v49 = vsel %vm272_vm11, %v395_v9, 0.0  ;;  %v508_v50 = vadd.f32 %v505_v42, %v504_v0  ;;  %v517_v51 = vsel %vm257_vm3, %v1434_v27, 0.0 }
  0x98   : > { %v956_v23 = vpop.eup %955  ;;  %v518_v53 = vsel %vm1708_vm2, %v393_v4, 0.0  ;;  %v467_v56 = vadd.f32 %v466_v39, %v464_v30  ;;  %v479_v58 = vadd.f32 %v478_v41, %v476_v37  ;;  %v519_v60 = vsel %vm1706_vm1, %v394_v6, 0.0 }
  0x99   : > { %v785_v54 = vmul.f32 %v956_v23, %v1448_v55  ;;  %v958_v44 = vpop.eup %957  ;;  %v509_v3 = vadd.f32 %v508_v50, %v506_v43  ;;  %v520_v8 = vsel %vm1707_vm0, %v395_v9, 0.0  ;;  %v521_v52 = vadd.f32 %v518_v53, %v517_v51 }
  0x9a   : > { %v547_v27 = vsel %vm273_vm12, %v1436_v29, 0.0  ;;  %v801_v2 = vmul.f32 %v958_v44, %v1450_v63  ;;  %v468_v24 = vrot.slane %v467_v56, 4  ;;  %v480_v30 = vadd.f32 %v479_v58, %v477_v38 }
  0x9b   : > { %v787_v4 = vsel %vm786_vm14, %v1448_v55, %v785_v54  ;;  %v960_v31 = vpop.eup %959  ;;  %vm1715_vm7 = vcmp.eq.f32.partialorder %v1448_v55, 0.0  ;;  %v510_v32 = vadd.f32 %v509_v3, %v507_v49  ;;  %v522_v35 = vadd.f32 %v521_v52, %v519_v60 }
  0x9c   : > { %v790_v6 = vsel %vm1715_vm7, %v789_v17, %v787_v4  ;;  %vm1716_vm8 = vcmp.eq.s32.totalorder %v1271_v14, 3  ;;  %v803_v37 = vsel %vm802_vm15, %v1450_v63, %v801_v2  ;;  %v817_v0 = vmul.f32 %v960_v31, %v1463_v7 }
  0x9d   : > { %v548_v9 = vsel %vm1716_vm8, %v1457_v5, 0.0  ;;  %963 = vrsqrt.f32 %v790_v6  ;;  %v469_v39 = vadd.f32 %v468_v24, %v467_v56  ;;  %v962_v41 = vpop.eup %961  ;;  %v806_v38 = vsel %vm796_vm13, %v805_v21, %v803_v37 }
  0x9e   : > { %v481_v42 = vrot.slane %v480_v30, 4  ;;  %v511_v17 = vrot.slane %v510_v32, 4  ;;  %v523_v43 = vadd.f32 %v522_v35, %v520_v8  ;;  %vm781_vm9 = vcmp.lt.f32.partialorder %v1448_v55, 0.0 }
  0x9f   : > { %965 = vrsqrt.f32 %v806_v38  ;;  %vm1717_vm10 = vcmp.eq.f32.partialorder %v1463_v7, inf  ;;  %v833_v49 = vmul.f32 %v962_v41, %v1477_v61  ;;  %v470_v50 = vrot.slane %v469_v39, 2 }
  0xa0   : > { %v819_v23 = vsel %vm1717_vm10, %v1463_v7, %v817_v0  ;;  %v482_v53 = vadd.f32 %v481_v42, %v480_v30  ;;  %v512_v54 = vadd.f32 %v511_v17, %v510_v32  ;;  %v524_v56 = vrot.slane %v523_v43, 4 }
  0xa1   : > { %v822_v51 = vsel %vm812_vm5, %v821_v22, %v819_v23  ;;  %vm797_vm11 = vcmp.lt.f32.partialorder %v1450_v63, 0.0  ;;  %v835_v21 = vsel %vm834_vm4, %v1477_v61, %v833_v49  ;;  %v471_v58 = vadd.f32 %v470_v50, %v469_v39 }
  0xa2   : > { %967 = vrsqrt.f32 %v822_v51  ;;  %vm1718_vm12 = vcmp.eq.s32.totalorder %v1273_v15, 3  ;;  %v838_v44 = vsel %vm828_vm6, %v837_v26, %v835_v21  ;;  %v483_v3 = vrot.slane %v482_v53, 2 }
  0xa3   : > { %v549_v60 = vsel %vm1718_vm12, %v1461_v34, 0.0  ;;  %v513_v22 = vrot.slane %v512_v54, 2  ;;  %v525_v8 = vadd.f32 %v524_v56, %v523_v43  ;;  %v814_v52 = vand.u32 2147483647, %v1463_v7 }
  0xa4   : > { %969 = vrsqrt.f32 %v838_v44  ;;  %vm1719_vm14 = vcmp.eq.s32.totalorder %v1275_v16, 3  ;;  %v551_v2 = vadd.f32 %v548_v9, %v547_v27  ;;  %vm590_vm15 = vcmask 1040384  }
  0xa5   : > { %v550_v4 = vsel %vm1719_vm14, %v1469_v36, 0.0  ;;  %v484_v24 = vadd.f32 %v483_v3, %v482_v53  ;;  %v514_v30 = vadd.f32 %v513_v22, %v512_v54  ;;  %v526_v31 = vrot.slane %v525_v8, 2 }
  0xa6   : > { %v560_v6 = vsel %vm257_vm3, %v1436_v29, 0.0  ;;  %vm1576_vm4 = vcmp.eq.f32.partialorder %v782_v10, inf  ;;  %v830_v32 = vand.u32 2147483647, %v1477_v61  ;;  %v552_v35 = vadd.f32 %v551_v2, %v549_v60 }
  0xa7   : > { %v561_v27 = vsel %vm1708_vm2, %v1457_v5, 0.0  ;;  %vm813_vm7 = vcmp.lt.f32.partialorder %v1463_v7, 0.0  ;;  %v472_v9 = vrot.slane %v471_v58, 1  ;;  %v515_v37 = vrot.slane %v514_v30, 1  ;;  %v964_v0 = vpop.eup %963 }
  0xa8   : > { %v562_v29 = vsel %vm1706_vm1, %v1461_v34, 0.0  ;;  %vm1590_vm8 = vcmp.eq.f32.partialorder %v798_v20, inf  ;;  %v485_v39 = vrot.slane %v484_v24, 1  ;;  %v553_v41 = vadd.f32 %v552_v35, %v550_v4 }
  0xa9   : > { %v564_v38 = vadd.f32 %v561_v27, %v560_v6  ;;  %v792_v5 = vmul.f32 %v964_v0, %v1448_v55  ;;  %vm1595_vm10 = vcmp.eq.f32.partialorder %v814_v52, inf  ;;  %v527_v17 = vadd.f32 %v526_v31, %v525_v8  ;;  %v966_v43 = vpop.eup %965 }
  0xaa   : > { %v563_v34 = vsel %vm1707_vm0, %v1469_v36, 0.0  ;;  %vm829_vm12 = vcmp.lt.f32.partialorder %v1477_v61, 0.0  ;;  %vm1603_vm14 = vcmp.eq.f32.partialorder %v830_v32, inf  ;;  %v554_v23 = vrot.slane %v553_v41, 4 }
  0xab   : > { %v565_v49 = vadd.f32 %v564_v38, %v562_v29  ;;  %v793_v50 = vsel %vm781_vm9, nan, %v792_v5  ;;  %v808_v51 = vmul.f32 %v966_v43, %v1450_v63  ;;  %v473_v53 = vadd.f32 %v472_v9, %v471_v58 }
  0xac   : > { %v516_v54 = vadd.f32 %v515_v37, %v514_v30  ;;  %vm592_vm1 = vcmask 1041408   ;;  %v968_v56 = vpop.eup %967  ;;  %vm1728_vm0 = vcmp.eq.f32.partialorder %v1448_v55, 0.0  ;;  %v486_v21 = vadd.f32 %v485_v39, %v484_v24 }
  0xad   : > { %v794_v36 = vsel %vm1728_vm0, 0.0, %v793_v50  ;;  %v555_v60 = vadd.f32 %v554_v23, %v553_v41  ;;  %v566_v44 = vadd.f32 %v565_v49, %v563_v34  ;;  %vm594_vm2 = vcmask 1042432  }
  0xae   : > { %v795_v3 = vsel %vm1576_vm4, inf, %v794_v36  ;;  %v809_v22 = vsel %vm797_vm11, nan, %v808_v51  ;;  %v824_v8 = vmul.f32 %v968_v56, %v1463_v7  ;;  %v528_v52 = vrot.slane %v527_v17, 1  ;;  %v970_v58 = vpop.eup %969 }
  0xaf   : > { %vm596_vm9 = vcmask 1043456   ;;  %v810_v4 = vsel %vm796_vm13, 0.0, %v809_v22  ;;  %v436_v55 = vmul.f32 0.4, %v795_v3  ;;  %v556_v2 = vrot.slane %v555_v60, 2 }
  0xb0   : > { %v567_v24 = vrot.slane %v566_v44, 4  ;;  %v811_v30 = vsel %vm1590_vm8, inf, %v810_v4  ;;  %v825_v31 = vsel %vm813_vm7, nan, %v824_v8  ;;  %v840_v6 = vmul.f32 %v970_v58, %v1477_v61  ;;  %v606_v22 = vld [vmem:[%s1255_s20 + $0x8] sm:$0x3] }
  0xb1   : > { %v591_v26 = vsel %vm590_vm15, %v473_v53, %v516_v54  ;;  %v826_v32 = vsel %vm812_vm5, 0.0, %v825_v31  ;;  %v437_v35 = vmul.f32 0.4, %v811_v30  ;;  %vm1729_vm0 = vcmp.eq.s32.totalorder %v1269_v13, 0 }
  0xb2   : > { %v440_v63 = vsel %vm1729_vm0, %v436_v55, 0.6  ;;  %v557_v27 = vadd.f32 %v556_v2, %v555_v60  ;;  %v827_v9 = vsel %vm1595_vm10, inf, %v826_v32  ;;  %v841_v37 = vsel %vm829_vm12, nan, %v840_v6 }
  0xb3   : > { %v444_v29 = vmul.f32 %v440_v63, %v416_v46  ;;  %v568_v0 = vadd.f32 %v567_v24, %v566_v44  ;;  %v842_v7 = vsel %vm828_vm6, 0.0, %v841_v37  ;;  %v438_v10 = vmul.f32 0.4, %v827_v9 }
  0xb4   : > { %vm1730_vm13 = vcmp.eq.s32.totalorder %v1271_v14, 0  ;;  %v558_v41 = vrot.slane %v557_v27, 1  ;;  %v843_v38 = vsel %vm1603_vm14, inf, %v842_v7  ;;  %vm1731_vm5 = vcmp.eq.s32.totalorder %v1273_v15, 0 }
  0xb5   : > { %v441_v39 = vsel %vm1730_vm13, %v437_v35, 0.6  ;;  %v448_v11 = vsel %vm257_vm3, %v444_v29, 0.0  ;;  %v569_v33 = vrot.slane %v568_v0, 2  ;;  %v439_v46 = vmul.f32 0.4, %v843_v38 }
  0xb6   : > { %v445_v5 = vmul.f32 %v441_v39, %v417_v48  ;;  %v442_v61 = vsel %vm1731_vm5, %v438_v10, 0.6  ;;  %v529_v42 = vadd.f32 %v528_v52, %v527_v17  ;;  %v559_v34 = vadd.f32 %v558_v41, %v557_v27 }
  0xb7   : > { %v446_v43 = vmul.f32 %v442_v61, %v418_v59  ;;  %vm1732_vm6 = vcmp.ge.s32.totalorder %v1271_v14, 0  ;;  %v545_v12 = vrot.slane %v1427_v47, 1  ;;  %v570_v57 = vadd.f32 %v569_v33, %v568_v0 }
  0xb8   : > { %v449_v20 = vsel %vm1732_vm6, %v445_v5, 0.0  ;;  %vm1733_vm11 = vcmp.eq.s32.totalorder %v1275_v16, 0  ;;  %v593_v23 = vsel %vm592_vm1, %v591_v26, %v559_v34  ;;  %vm598_vm3 = vcmask 1044480  }
  0xb9   : > { %v443_v13 = vsel %vm1733_vm11, %v439_v46, 0.6  ;;  %v452_v48 = vadd.f32 %v449_v20, %v448_v11  ;;  %vm1734_vm4 = vcmp.ge.s32.totalorder %v1273_v15, 0  ;;  %v571_v62 = vrot.slane %v570_v57, 1 }
  0xba   : > { %v447_v17 = vmul.f32 %v443_v13, %v419_v40  ;;  %v450_v18 = vsel %vm1734_vm4, %v446_v43, 0.0  ;;  %v595_v14 = vsel %vm594_vm2, %v593_v23, %v486_v21  ;;  %v503_v49 = vadd.f32 %v502_v45, %v1421_v28 }
  0xbb   : > { %v453_v59 = vadd.f32 %v452_v48, %v450_v18  ;;  %v586_v50 = vrot.slane %v1430_v25, 2  ;;  %v597_v51 = vsel %vm596_vm9, %v595_v14, %v529_v42  ;;  %vm1735_vm1 = vcmp.ge.s32.totalorder %v1275_v16, 0 }
  0xbc   : > { %v451_v19 = vsel %vm1735_vm1, %v447_v17, 0.0  ;;  %v546_v1 = vadd.f32 %v545_v12, %v1427_v47  ;;  %v572_v15 = vadd.f32 %v571_v62, %v570_v57  ;;  %vm600_vm7 = vcmask 1045504  }
  0xbd   : > { %v454_v40 = vadd.f32 %v453_v59, %v451_v19  ;;  %vm602_vm2 = vcmask 1046528   ;;  %v587_v28 = vadd.f32 %v586_v50, %v1430_v25 }
  0xbe   : > { %v599_v53 = vsel %vm598_vm3, %v597_v51, %v572_v15 }
  0xbf   : > { %v455_v54 = vrot.slane %v454_v40, 4  ;;  %v601_v45 = vsel %vm600_vm7, %v599_v53, %v503_v49  ;;  %v588_v60 = vrot.slane %v587_v28, 1 }
  0xc0   : > { %v603_v56 = vsel %vm602_vm2, %v601_v45, %v546_v1 }
  0xc1   : > { %v456_v36 = vadd.f32 %v455_v54, %v454_v40  ;;  %609 = vst [vmem:[%s1255_s20] sm:$0xff] %v603_v56  ;;  %v589_v3 = vadd.f32 %v588_v60, %v587_v28 }
  0xc3   : > { %v457_v21 = vrot.slane %v456_v36, 2 }
  0xc5   : > { %v458_v16 = vadd.f32 %v457_v21, %v456_v36 }
  0xc7   : > { %v459_v44 = vrot.slane %v458_v16, 1 }
  0xc9   : > { %v460_v47 = vadd.f32 %v459_v44, %v458_v16 }
  0xcb   : > { %v604_v8 = vsel %vm590_vm15, %v589_v3, %v460_v47 }
  0xcc   : > { %v608_v52 = vadd.f32 %v606_v22, %v604_v8 }
  0xce   : > { %610 = vst [vmem:[%s1255_s20 + $0x8] sm:$0x3] %v608_v52 }
  0xcf PF: > { %s18_s14 = sadd.s32 1, %s1085_s14   ;;  %s1736_s9 = smov %s1069_s10 }
  0xd0   : > { %p15_p9 = scmp.ge.s32.totalorder %s18_s14, 4   ;;  %s1737_s10 = smov %s1073_s11 }
  0xd1   : > { %s1738_s11 = smov %s1156_s21  ;;  %s1739_s12 = smov %s1081_s13 }
  0xd2   : > { %s1740_s13 = smov %s1742_s16  ;;  %17 = sbr.rel (!%p15_p9) target bundleno = 6 (0x6), region = 88 }
  0xd9   :  { %640 = vsyncpa [#allocation3], 1 }
  0xda   :  { %642 = vsyncpa [#allocation3 + $0x1], 1 }
  0xdb   :  { %643 = vsyncpa [#allocation5], 1 }
  0xdc   :  { %645 = vsyncpa [#allocation5 + $0x1], 1 }

</bundles_post_ra>
